<compile_context>
chip_gen: v5e
topology: v5e:2x2
jax: 0.10.0
libtpu: 0.0.40
codegen_flags: <defaults>
</compile_context>

<pallas_src>
from functools import partial

import jax
import jax.numpy as jnp
from jax.experimental import pallas as pl
from jax.experimental.pallas import tpu as pltpu


def _conv_matmul_kernel(w_ref, b_ref, p_ref, o_ref):
    # w_ref: (C_pad, K_pad)   bf16 weights           (resident across grid)
    # b_ref: (C_pad, 1)       f32  bias column       (resident across grid)
    # p_ref: (K_pad, tile_m)  bf16 im2col patch tile (M on the lane axis)
    # o_ref: (C_pad, tile_m)  f32  output tile       (lane-dense stores)
    acc = jnp.dot(w_ref[...], p_ref[...], preferred_element_type=jnp.float32)
    o_ref[...] = (acc + b_ref[...]).astype(o_ref.dtype)


def _cdiv(a, b):
    return -(-a // b)


def _round_up(x, m):
    return _cdiv(x, m) * m


def _pick_tile_m(m, max_tile=32768):
    """Lane-axis tile over M: multiple of 128, capped at max_tile, and chosen so
    the grid has an even number of steps (>= 2) whenever M > 128 so the
    'parallel' grid axis can be sharded across both v7x TensorCores."""
    if m <= 128:
        return 128
    steps = _cdiv(m, max_tile)
    if steps < 2:
        steps = 2
    elif steps % 2:
        steps += 1
    return max(128, _round_up(_cdiv(m, steps), 128))


@partial(jax.jit, static_argnames=("stride",))
def conv2d_pallas(x, weight, bias, *, stride=1):
    """x: (N, C, H, W) f32; weight: (C_out, C, KH, KW); bias: (C_out,)."""
    N, C, H, W = x.shape
    C_out, _, KH, KW = weight.shape
    H_out = (H - KH) // stride + 1
    W_out = (W - KW) // stride + 1

    M = N * H_out * W_out
    Kdim = C * KH * KW

    # Hardware-friendly padded sizes.
    K_pad = _round_up(Kdim, 8)      # sublane axis of the patch tile
    C_pad = _round_up(C_out, 8)     # sublane axis of the output tile
    tile_m = _pick_tile_m(M)        # lane-axis tile (multiple of 128)
    grid_m = _cdiv(M, tile_m)
    M_pad = grid_m * tile_m

    # ---- im2col, built directly in (Kdim, M) layout, in bf16 (wrapper glue) ----
    # Slab order (c outer, kh, kw inner) matches weight.reshape(C_out, Kdim)
    # row-major flattening of (C, KH, KW).
    xb = x.astype(jnp.bfloat16)     # cast BEFORE the 9x amplification
    slabs = []
    for c in range(C):
        for kh in range(KH):
            for kw in range(KW):
                slabs.append(
                    xb[:, c,
                       kh:kh + stride * H_out:stride,
                       kw:kw + stride * W_out:stride]      # (N, H_out, W_out)
                )
    p_km = jnp.stack(slabs, axis=0).reshape(Kdim, M)        # (Kdim, M) bf16
    p_km = jnp.pad(p_km, ((0, K_pad - Kdim), (0, M_pad - M)))

    # weights: (C_out, Kdim) -> (C_pad, K_pad) bf16; bias: (C_pad, 1) f32
    w_ck = weight.reshape(C_out, Kdim).astype(jnp.bfloat16)
    w_ck = jnp.pad(w_ck, ((0, C_pad - C_out), (0, K_pad - Kdim)))
    b_c1 = jnp.pad(bias.astype(jnp.float32), (0, C_pad - C_out)).reshape(C_pad, 1)

    out_flat = pl.pallas_call(
        _conv_matmul_kernel,
        out_shape=jax.ShapeDtypeStruct((C_pad, M_pad), jnp.float32),
        grid=(grid_m,),
        in_specs=[
            pl.BlockSpec((C_pad, K_pad), lambda i: (0, 0)),   # weights (resident)
            pl.BlockSpec((C_pad, 1), lambda i: (0, 0)),       # bias    (resident)
            pl.BlockSpec((K_pad, tile_m), lambda i: (0, i)),  # patch tile (lane = M)
        ],
        out_specs=pl.BlockSpec((C_pad, tile_m), lambda i: (0, i)),
        compiler_params=pltpu.CompilerParams(
            dimension_semantics=("parallel",),
            # ~6 MiB actually needed at the 32768 cap; set the limit explicitly
            # so aggressive tiles never trip the lower v5e scoped default.
            vmem_limit_bytes=32 * 1024 * 1024,
        ),
    )(w_ck, b_c1, p_km)

    # (C_pad, M_pad) -> strip padding -> (C_out, N, H_out, W_out) -> NCHW.
    # Cheap relative to the input-stream fixes; fuses under jit.
    out = out_flat[:C_out, :M].reshape(C_out, N, H_out, W_out)
    return out.transpose(1, 0, 2, 3)


if __name__ == "__main__":
    key = jax.random.PRNGKey(0)
    kw_key, kb_key, kx_key = jax.random.split(key, 3)

    # Conv2d(3, 6, kernel_size=3): weight (6, 3, 3, 3), bias (6,)
    # deterministic init mimicking PyTorch's uniform(-1/sqrt(fan_in), 1/sqrt(fan_in))
    fan_in = 3 * 3 * 3
    bound = 1.0 / (fan_in ** 0.5)
    weight = jax.random.uniform(kw_key, (6, 3, 3, 3),
                                minval=-bound, maxval=bound, dtype=jnp.float32)
    bias = jax.random.uniform(kb_key, (6,),
                              minval=-bound, maxval=bound, dtype=jnp.float32)

    # input: NCHW, batch=2, channels=3 (module requires in_channels=3), 16x16 spatial
    x = jax.random.normal(kx_key, (2, 3, 16, 16), dtype=jnp.float32)

    out = conv2d_pallas(x, weight, bias)
    out = jax.block_until_ready(out)
    assert out.shape == (2, 6, 14, 14), out.shape

    # Reference: XLA conv on bf16-rounded inputs (kernel streams bf16, accumulates f32).
    xb = x.astype(jnp.bfloat16).astype(jnp.float32)
    wb = weight.astype(jnp.bfloat16).astype(jnp.float32)
    ref = jax.lax.conv_general_dilated(
        xb, wb, window_strides=(1, 1), padding="VALID",
        dimension_numbers=("NCHW", "OIHW", "NCHW"),
    ) + bias[None, :, None, None]
    assert jnp.allclose(out, ref, atol=1e-3, rtol=1e-3), \
        float(jnp.max(jnp.abs(out - ref)))

    # Sanity vs full-f32 reference (looser tolerance for the bf16 input stream).
    ref32 = jax.lax.conv_general_dilated(
        x, weight, window_strides=(1, 1), padding="VALID",
        dimension_numbers=("NCHW", "OIHW", "NCHW"),
    ) + bias[None, :, None, None]
    assert jnp.allclose(out, ref32, atol=5e-2, rtol=5e-2), \
        float(jnp.max(jnp.abs(out - ref32)))

    print("KERNEL_OK")
</pallas_src>

<mosaic_0001>
module attributes {stable_mosaic.version = 11 : i64} {
  func.func @_conv_matmul_kernel(%arg0: i32, %arg1: memref<8x32xbf16, #tpu.memory_space<vmem>>, %arg2: memref<8x1xf32, #tpu.memory_space<vmem>>, %arg3: memref<32x256xbf16, #tpu.memory_space<vmem>>, %arg4: memref<8x256xf32, #tpu.memory_space<vmem>>) attributes {dimension_semantics = [#tpu.dimension_semantics<parallel>], iteration_bounds = array<i64: 2>, scalar_prefetch = 0 : i64, scratch_operands = 0 : i64, tpu.core_type = #tpu.core_type<tc>, window_params = [{pipeline_mode = #tpu.pipeline_mode<synchronous>, transform_indices = @transform_0, window_bounds = array<i64: 8, 32>}, {pipeline_mode = #tpu.pipeline_mode<synchronous>, transform_indices = @transform_1, window_bounds = array<i64: 8, 1>}, {transform_indices = @transform_2, window_bounds = array<i64: 32, 256>}, {transform_indices = @transform_3, window_bounds = array<i64: 8, 256>}]} {
    %c0 = arith.constant 0 : index
    %c0_0 = arith.constant 0 : index
    %0 = vector.load %arg1[%c0, %c0_0] : memref<8x32xbf16, #tpu.memory_space<vmem>>, vector<8x32xbf16>
    %c0_1 = arith.constant 0 : index
    %c0_2 = arith.constant 0 : index
    %1 = vector.load %arg3[%c0_1, %c0_2] : memref<32x256xbf16, #tpu.memory_space<vmem>>, vector<32x256xbf16>
    %cst = arith.constant dense<0.000000e+00> : vector<8x256xf32>
    %2 = tpu.matmul %0, %1, %cst {dimension_numbers = #tpu.dot_dimension_numbers<[1], [0], [0], [1], [0, 0, 1, 1], [], []>} : vector<8x32xbf16>, vector<32x256xbf16>, vector<8x256xf32> -> vector<8x256xf32>
    %c0_3 = arith.constant 0 : index
    %c0_4 = arith.constant 0 : index
    %3 = vector.load %arg2[%c0_3, %c0_4] : memref<8x1xf32, #tpu.memory_space<vmem>>, vector<8x1xf32>
    %4 = vector.broadcast %3 : vector<8x1xf32> to vector<8x256xf32>
    %5 = arith.addf %2, %4 : vector<8x256xf32>
    %c0_5 = arith.constant 0 : index
    %c0_6 = arith.constant 0 : index
    %6 = vector.load %arg4[%c0_5, %c0_6] : memref<8x256xf32, #tpu.memory_space<vmem>>, vector<8x256xf32>
    tpu.vector_store %arg4[%c0_5, %c0_6], %5 {strides = array<i32>} : memref<8x256xf32, #tpu.memory_space<vmem>>, vector<8x256xf32>,
    return
  }
  func.func @transform_0(%arg0: i32) -> (i32, i32) {
    %c0_i32 = arith.constant 0 : i32
    %c0_i32_0 = arith.constant 0 : i32
    %c0_i32_1 = arith.constant 0 : i32
    return %c0_i32, %c0_i32_0 : i32, i32
  }
  func.func @transform_1(%arg0: i32) -> (i32, i32) {
    %c0_i32 = arith.constant 0 : i32
    %c0_i32_0 = arith.constant 0 : i32
    %c0_i32_1 = arith.constant 0 : i32
    return %c0_i32, %c0_i32_0 : i32, i32
  }
  func.func @transform_2(%arg0: i32) -> (i32, i32) {
    %c0_i32 = arith.constant 0 : i32
    %c0_i32_0 = arith.constant 0 : i32
    return %c0_i32, %arg0 : i32, i32
  }
  func.func @transform_3(%arg0: i32) -> (i32, i32) {
    %c0_i32 = arith.constant 0 : i32
    %c0_i32_0 = arith.constant 0 : i32
    return %c0_i32, %arg0 : i32, i32
  }
}

</mosaic_0001>

<bundles_post_ra>
// kernel: conv2d_pallas.1
= control target key start
LH: loop header
LB: loop body
LE: loop exit
PB: predicated region body
PF: predicated region fallthrough
CT: control target
= control target key end

     0   :  { %s454_s12 = smov 0   ;;  %s456_s13 = smov 0   ;;  %s512_s0 = inlined_call_operand.vmem [shape: bf16[8,32], index: 0, kind: input, shape index: {}]   ;;  %s513_s1 = inlined_call_operand.vmem [shape: f32[8,1], index: 1, kind: input, shape index: {}]   ;;  %s514_s2 = inlined_call_operand.vmem [shape: bf16[32,512], index: 2, kind: input, shape index: {}]   ;;  %s515_s3 = inlined_call_operand.vmem [shape: f32[8,512], index: 3, kind: output, shape index: {}]  }
   0x1   :  { %s458_s14 = smov 0  }
   0x2 LB: > { %s347_s15 = sadd.s32 4294967295, %s431_s14   ;;  %s471_s16 = sadd.s32 1, %s431_s14   ;;  %s431_s14 = sphi %s458_s14, %s518_s14   ;;  %s427_s13 = sphi %s456_s13, %s517_s13   ;;  %s423_s12 = sphi %s454_s12, %s516_s12  }
   0x3   : > { %s59_s17 = ssub.s32 %s431_s14, %s471_s16  ;;  %s62_s18 = sadd.s32 1, %s427_s13 }
   0x4   : > { %p60_p0 = scmp.eq.s32.totalorder %s59_s17, 0  ;;  %p69_p1 = scmp.ne.s32.totalorder %s427_s13, %s423_s12 }
   0x5   : > { %p70_p2 = scmp.eq.s32.totalorder %s431_s14, 0  ;;  %p350_p4 = scmp.ge.s32.totalorder %s431_s14, 2 }
   0x6   : > { %s480_s19 = scalar_select %p60_p0, %s427_s13, %s62_s18  }
   0x7   : > { %p71_p3 = por %p70_p2, %p69_p1  ;;  %127 = sbr.rel (%p350_p4) target bundleno = 20 (0x14), region = 24 }
   0xc   : > { %130 = sbr.rel (!%p71_p3) target bundleno = 20 (0x14), region = 28  ;;  %s132_s20 = sand.u32 (%p71_p3), 1, %s427_s13  }
   0xd   : > { %s378_s21 = sshll.u32 (%p71_p3), %s431_s14, 3  ;;  %s351_s22 = sshll.u32 (%p71_p3), %s132_s20, 5 }
   0xe   : > { %s137_s25 = scalar_lea.vmem (%p71_p3), %s514_s2, %s378_s21  ;;  %s134_s26 = scalar_lea.vmem (%p71_p3), [#allocation2], %s351_s22 }
   0xf   : > { %v172_v0 = vld [vmem:[%s137_s25] sm:$0xff] (%p71_p3)  ;;  %v174_v1 = vld [vmem:[%s137_s25 + $0x10] sm:$0xff] (%p71_p3) }
  0x10   : > { %v176_v2 = vld [vmem:[%s137_s25 + $0x20] sm:$0xff] (%p71_p3)  ;;  %173 = vst [vmem:[%s134_s26] sm:$0xff] (%p71_p3), %v172_v0  ;;  %v178_v3 = vld [vmem:[%s137_s25 + $0x30] sm:$0xff] (%p71_p3) }
  0x11   : > { %175 = vst [vmem:[%s134_s26 + $0x8] sm:$0xff] %v174_v1 }
  0x12   : > { %177 = vst [vmem:[%s134_s26 + $0x10] sm:$0xff] %v176_v2 }
  0x13   : > { %179 = vst [vmem:[%s134_s26 + $0x18] sm:$0xff] %v178_v3 }
  0x14 PF: > { %p354_p5 = scmp.ge.s32.totalorder %s431_s14, 1  ;;  %p184_p6 = scmp.lt.s32.totalorder %s431_s14, 3 }
  0x16   : > { %p185_p7 = pnand %p354_p5, %p184_p6 }
  0x17   : > { %s191_s27 = sand.u32 (!%p185_p7), 1, %s423_s12   ;;  %s356_s7 = sshll.u32 (!%p185_p7), %s347_s15, 1 }
  0x18   : > { %188 = sbr.rel (%p185_p7) target bundleno = 174 (0xae), region = 66  ;;  %s355_s30 = sshll.u32 (!%p185_p7), %s191_s27, 5 }
  0x19   : > { %s193_s4 = scalar_lea.vmem (!%p185_p7), [#allocation2], %s355_s30  ;;  %p216_p8 = scmp.lt.s32.totalorder (!%p185_p7), %s356_s7, 3 }
  0x1d   : > { %v227_v4 = vld [vmem:[%s513_s1] sm:$0xff]  ;;  %v433_v5 = vmov 0   ;;  %v368_v6 = vld [vmem:[%s193_s4 + $0x10] sm:$0xf]  ;;  %v382_v7 = vld [vmem:[%s193_s4 + $0x14] sm:$0xf0] }
  0x1e   : > { %408 = vset.pattern.permute.xlu0 %v433_v5  ;;  %v381_v8 = vld [vmem:[%s193_s4 + $0x14] sm:$0xf]  ;;  %v369_v9 = vor.u32 %v382_v7, %v368_v6  ;;  %v370_v10 = vld [vmem:[%s193_s4 + $0x18] sm:$0xf0]  ;;  %v360_v11 = vld [vmem:[%s193_s4] sm:$0xf] }
  0x1f   : > { %230 = vperm.xlu0 %408, %v227_v4   ;;  %v380_v12 = vld [vmem:[%s193_s4 + $0x4] sm:$0xf0]  ;;  %v373_v13 = vor.u32 %v381_v8, %v370_v10  ;;  %v379_v14 = vld [vmem:[%s193_s4 + $0x4] sm:$0xf]  ;;  %v362_v15 = vld [vmem:[%s193_s4 + $0x8] sm:$0xf0] }
  0x20   : > { %263 = vmatpush.bf16.msra.mxu0 %v369_v9  ;;  %v361_v16 = vor.u32 %v380_v12, %v360_v11  ;;  %v365_v17 = vor.u32 %v379_v14, %v362_v15  ;;  %v222_v18 = vld [vmem:[%s512_s0] sm:$0xf]  ;;  %vm253_vm0 = vcmask 261120   ;;  %s520_s7 = smov (!%p216_p8, %s356_s7), 3 }
  0x21   : > { %276 = vmatpush.bf16.msra.mxu1 %v373_v13  ;;  %s357_s8 = sshll.u32 %s520_s7, 3 }
  0x22   : > { %s219_s11 = scalar_lea.vmem %s515_s3, %s357_s8 }
  0x24   : > { %264 = vmatpush.bf16.msra.mxu0 %v361_v16 }
  0x25   : > { %277 = vmatpush.bf16.msra.mxu1 %v365_v17 }
  0x27   : > { %374 = vmatmul.msk.bf16.vlgmr.msra.gmra.mxu0 %vm253_vm0, %v222_v18 }
  0x28   : > { %375 = vmatmul.msk.bf16.vlgmr.msra.gmra.mxu1 %vm253_vm0, %v222_v18 }
  0x91   : > { %v231_v19 = vpop.permute.xlu0 %230 }
  0xa4   : > { %v266_v20 = vpop.f32.mrf.mxu0 }
  0xa5   : > { %v267_v21 = vadd.f32 %v266_v20, %v231_v19  ;;  %v279_v22 = vpop.f32.mrf.mxu1 }
  0xa6   : > { %v280_v23 = vadd.f32 %v279_v22, %v231_v19 }
  0xa7   : > { %283 = vst [vmem:[%s219_s11] sm:$0xff] %v267_v21 }
  0xa8   : > { %284 = vst [vmem:[%s219_s11 + $0x8] sm:$0xff] %v280_v23 }
  0xac   : > { %v268_v24 = vpop.f32.mrf.mxu0 }
  0xad   : > { %v281_v25 = vpop.f32.mrf.mxu1 }
  0xae PF: > { %p10_p9 = scmp.ge.s32.totalorder %s471_s16, 4   ;;  %s516_s12 = smov %s427_s13 }
  0xaf   : > { %s517_s13 = smov %s480_s19  ;;  %s518_s14 = smov %s471_s16 }
  0xb0   :  { %12 = sbr.rel (!%p10_p9) target bundleno = 2 (0x2), region = 105 }

</bundles_post_ra>
